<compile_context>
chip_gen: v7x
topology: tpu7x:2x2x1
jax: 0.10.0
libtpu: 0.0.40
codegen_flags: <defaults>
</compile_context>

<pallas_src>
import numpy as np
import jax
import jax.numpy as jnp
from jax.experimental import pallas as pl
from jax.experimental.pallas import tpu as pltpu

# ----------------------------- config (from module __init__) -----------------------------
SR = 32000
N_FFT = 3200
HOP = 3200
WIN = 3200
N_FREQ = N_FFT // 2 + 1          # 1601
MEL = 64
FMIN, FMAX = 50.0, 14000.0
CLASSES = 4
AMIN = 1e-10
REF = 1.0
BN_EPS = 1e-5
HID = 128
TM_DEFAULT = 1024                        # rows per grid step (large tile -> ~85% HBM roofline)
F_PAD = ((N_FREQ + 127) // 128) * 128    # 1664, lane-aligned freq dim
C_PAD = 128                              # lane-dense (padded) class dim


# ----------------------------- slaney mel filterbank (librosa-style) ---------------------
def _hz_to_mel(f):
    f = np.asarray(f, dtype=np.float64)
    f_sp = 200.0 / 3.0
    mels = f / f_sp
    min_log_hz = 1000.0
    min_log_mel = min_log_hz / f_sp
    logstep = np.log(6.4) / 27.0
    return np.where(f >= min_log_hz,
                    min_log_mel + np.log(np.maximum(f, 1e-12) / min_log_hz) / logstep,
                    mels)


def _mel_to_hz(m):
    m = np.asarray(m, dtype=np.float64)
    f_sp = 200.0 / 3.0
    freqs = m * f_sp
    min_log_hz = 1000.0
    min_log_mel = min_log_hz / f_sp
    logstep = np.log(6.4) / 27.0
    return np.where(m >= min_log_mel,
                    min_log_hz * np.exp(logstep * (m - min_log_mel)),
                    freqs)


def mel_filterbank(sr, n_fft, n_mels, fmin, fmax):
    n_freq = n_fft // 2 + 1
    fftfreqs = np.linspace(0.0, sr / 2.0, n_freq)
    mel_f = _mel_to_hz(np.linspace(_hz_to_mel(fmin), _hz_to_mel(fmax), n_mels + 2))
    fdiff = np.diff(mel_f)
    ramps = mel_f[:, None] - fftfreqs[None, :]
    weights = np.zeros((n_mels, n_freq), dtype=np.float64)
    for i in range(n_mels):
        lower = -ramps[i] / fdiff[i]
        upper = ramps[i + 2] / fdiff[i + 1]
        weights[i] = np.maximum(0.0, np.minimum(lower, upper))
    enorm = 2.0 / (mel_f[2:n_mels + 2] - mel_f[:n_mels])   # slaney norm
    weights *= enorm[:, None]
    return weights.T.astype(np.float32)                     # (n_freq, n_mels)


# ----------------------------- Pallas kernel ---------------------------------------------
def mlp_kernel(spec_ref, mel_ref,
               w1_ref, b1_ref, w2_ref, b2_ref, w3_ref, b3_ref, w4_ref, b4_ref,
               out_ref):
    # spec_ref: (TM, F_PAD) bf16 power-spectrogram rows (freq on lanes).
    # mel_ref:  (F_PAD, MEL) bf16 mel filterbank (resident).
    # Weights (in, out) bf16; biases (1, out) f32.  Power_to_db + eval BatchNorm are
    # pre-folded into w1/b1 in the wrapper, so the kernel only takes a log here.
    mel = jnp.dot(spec_ref[...], mel_ref[...], preferred_element_type=jnp.float32)
    x = jnp.log(jnp.maximum(mel, AMIN))                      # (TM, MEL) f32

    def dense_relu(h, w_ref, b_ref):
        y = jnp.dot(h.astype(jnp.bfloat16), w_ref[...],
                    preferred_element_type=jnp.float32) + b_ref[...]
        return jnp.maximum(y, 0.0)

    h = dense_relu(x, w1_ref, b1_ref)
    h = dense_relu(h, w2_ref, b2_ref)
    h = dense_relu(h, w2_ref, b2_ref)      # fc2 applied twice, matching the reference forward
    h = dense_relu(h, w3_ref, b3_ref)
    logits = jnp.dot(h.astype(jnp.bfloat16), w4_ref[...],
                     preferred_element_type=jnp.float32) + b4_ref[...]

    # exact sigmoid (memory-bound kernel -> exact reciprocal is free); [0,1] preserved by bf16 cast
    out_ref[...] = (1.0 / (1.0 + jnp.exp(-logits))).astype(out_ref.dtype)


# ----------------------------- parameters ------------------------------------------------
def init_params(key):
    def xavier(key, fan_in, fan_out):
        bound = float(np.sqrt(6.0 / (fan_in + fan_out)))
        return jax.random.uniform(key, (fan_in, fan_out), jnp.float32, -bound, bound)

    k1, k2, k3, k4 = jax.random.split(key, 4)
    params = dict(
        melW=jnp.asarray(mel_filterbank(SR, N_FFT, MEL, FMIN, FMAX)),      # (1601, 64)
        w1=xavier(k1, MEL, HID),  b1=jnp.zeros((1, HID), jnp.float32),
        w2=xavier(k2, HID, HID),  b2=jnp.zeros((1, HID), jnp.float32),
        w3=xavier(k3, HID, MEL),  b3=jnp.zeros((1, MEL), jnp.float32),
        w4=xavier(k4, MEL, CLASSES), b4=jnp.zeros((1, CLASSES), jnp.float32),
        # bn0 with init_bn(): gamma=1, beta=0; eval running stats mean=0, var=1
        # TODO(synk): when loading a trained checkpoint, fold its running stats into these two.
        bn_scale=jnp.full((1, MEL), 1.0 / np.sqrt(1.0 + BN_EPS), jnp.float32),
        bn_bias=jnp.zeros((1, MEL), jnp.float32),
    )
    return params


def _choose_tm(n_rows, tm=TM_DEFAULT):
    """Large row tiles for HBM/MXU efficiency; on small inputs shrink so the grid keeps ~4
    steps (dual-TC load balance on v7x) with a floor of 16 rows (clean bf16 sublane pack)."""
    if n_rows >= 4 * tm:
        return tm
    t = pl.next_power_of_2(pl.cdiv(max(n_rows, 1), 4))
    return int(min(tm, max(16, t)))


# ----------------------------- forward wrapper -------------------------------------------
def mlp_forward(audio, params, tm=TM_DEFAULT):
    B, L = audio.shape
    frames = 1 + (L - WIN) // HOP

    # --- spectrogram (plain JAX glue: framing + hann window + rFFT power) ---
    starts = np.arange(frames) * HOP
    frame_idx = starts[:, None] + np.arange(WIN)[None, :]           # (frames, WIN)
    segs = audio[:, frame_idx].astype(jnp.float32)                  # (B, frames, WIN)
    window = (0.5 - 0.5 * np.cos(2.0 * np.pi * np.arange(WIN) / WIN)).astype(np.float32)
    spec = jnp.abs(jnp.fft.rfft(segs * window, axis=-1)) ** 2       # (B, frames, 1601), power=2

    # --- flatten + pad for the kernel (rows on sublanes, freq on lanes), bf16 stream ---
    N = B * frames
    TM = _choose_tm(N, tm)
    N_pad = pl.cdiv(N, TM) * TM

    spec_flat = jnp.pad(spec.reshape(N, N_FREQ).astype(jnp.bfloat16),
                        ((0, N_pad - N), (0, F_PAD - N_FREQ)))
    melW_pad = jnp.pad(params["melW"], ((0, F_PAD - N_FREQ), (0, 0))).astype(jnp.bfloat16)

    # fold power_to_db scale/offset + eval-BN affine directly into fc1:
    #   x = log(mel)*ls + lb ; fc1(x) = log(mel) @ (ls.T * w1) + (lb @ w1 + b1)
    log_scale = params["bn_scale"] * np.float32(10.0 / np.log(10.0))                   # (1, MEL)
    log_bias = params["bn_bias"] - np.float32(10.0 * np.log10(REF)) * params["bn_scale"]
    w1_fold = (params["w1"] * log_scale.T).astype(jnp.bfloat16)                        # (MEL, HID)
    b1_fold = params["b1"] + log_bias @ params["w1"]                                   # (1, HID) f32

    w2 = params["w2"].astype(jnp.bfloat16)
    w3 = params["w3"].astype(jnp.bfloat16)
    # lane-dense output: pad the class dim to 128
    w4_pad = jnp.pad(params["w4"], ((0, 0), (0, C_PAD - CLASSES))).astype(jnp.bfloat16)
    b4_pad = jnp.pad(params["b4"], ((0, 0), (0, C_PAD - CLASSES)))

    grid = (N_pad // TM,)
    out = pl.pallas_call(
        mlp_kernel,
        out_shape=jax.ShapeDtypeStruct((N_pad, C_PAD), jnp.bfloat16),
        grid=grid,
        in_specs=[
            pl.BlockSpec((TM, F_PAD), lambda i: (i, 0)),        # spectrogram rows (streamed, bf16)
            pl.BlockSpec((F_PAD, MEL), lambda i: (0, 0)),       # mel filterbank (resident)
            pl.BlockSpec((MEL, HID), lambda i: (0, 0)),         # fc1 W (log/BN folded in)
            pl.BlockSpec((1, HID), lambda i: (0, 0)),           # fc1 b (folded)
            pl.BlockSpec((HID, HID), lambda i: (0, 0)),         # fc2 W
            pl.BlockSpec((1, HID), lambda i: (0, 0)),           # fc2 b
            pl.BlockSpec((HID, MEL), lambda i: (0, 0)),         # fc3 W
            pl.BlockSpec((1, MEL), lambda i: (0, 0)),           # fc3 b
            pl.BlockSpec((MEL, C_PAD), lambda i: (0, 0)),       # fc_audioset W (padded)
            pl.BlockSpec((1, C_PAD), lambda i: (0, 0)),         # fc_audioset b (padded)
        ],
        out_specs=pl.BlockSpec((TM, C_PAD), lambda i: (i, 0)),  # lane-dense bf16 output slab
        compiler_params=pltpu.CompilerParams(dimension_semantics=("parallel",)),
    )(spec_flat, melW_pad,
      w1_fold, b1_fold, w2, params["b2"], w3, params["b3"], w4_pad, b4_pad)

    return out[:N, :CLASSES].astype(jnp.float32).reshape(B, frames, CLASSES)


# ----------------------------- main -------------------------------------------------------
if __name__ == "__main__":
    key = jax.random.PRNGKey(0)
    k_audio, k_params = jax.random.split(key)

    B, L = 2, 16000                     # small: 2 clips of 0.5 s -> 5 frames each
    audio = jax.random.normal(k_audio, (B, L), jnp.float32) * 0.1
    params = init_params(k_params)

    out = mlp_forward(audio, params)    # (B, frames, classes_num)
    out = jax.block_until_ready(out)

    assert out.shape == (B, 1 + (L - WIN) // HOP, CLASSES)
    assert bool(jnp.all(jnp.isfinite(out)))
    assert bool(jnp.all((out >= 0.0) & (out <= 1.0)))   # sigmoid output range
    print("KERNEL_OK")
</pallas_src>

<mosaic_0001>
module attributes {stable_mosaic.version = 11 : i64} {
  func.func @mlp_kernel(%arg0: i32, %arg1: memref<16x1664xbf16, #tpu.memory_space<vmem>>, %arg2: memref<1664x64xbf16, #tpu.memory_space<vmem>>, %arg3: memref<64x128xbf16, #tpu.memory_space<vmem>>, %arg4: memref<1x128xf32, #tpu.memory_space<vmem>>, %arg5: memref<128x128xbf16, #tpu.memory_space<vmem>>, %arg6: memref<1x128xf32, #tpu.memory_space<vmem>>, %arg7: memref<128x64xbf16, #tpu.memory_space<vmem>>, %arg8: memref<1x64xf32, #tpu.memory_space<vmem>>, %arg9: memref<64x128xbf16, #tpu.memory_space<vmem>>, %arg10: memref<1x128xf32, #tpu.memory_space<vmem>>, %arg11: memref<16x128xbf16, #tpu.memory_space<vmem>>) attributes {dimension_semantics = [#tpu.dimension_semantics<parallel>], iteration_bounds = array<i64: 1>, scalar_prefetch = 0 : i64, scratch_operands = 0 : i64, tpu.core_type = #tpu.core_type<tc>, window_params = [{transform_indices = @transform_0, window_bounds = array<i64: 16, 1664>}, {pipeline_mode = #tpu.pipeline_mode<synchronous>, transform_indices = @transform_1, window_bounds = array<i64: 1664, 64>}, {pipeline_mode = #tpu.pipeline_mode<synchronous>, transform_indices = @transform_2, window_bounds = array<i64: 64, 128>}, {pipeline_mode = #tpu.pipeline_mode<synchronous>, transform_indices = @transform_3, window_bounds = array<i64: 1, 128>}, {pipeline_mode = #tpu.pipeline_mode<synchronous>, transform_indices = @transform_4, window_bounds = array<i64: 128, 128>}, {pipeline_mode = #tpu.pipeline_mode<synchronous>, transform_indices = @transform_5, window_bounds = array<i64: 1, 128>}, {pipeline_mode = #tpu.pipeline_mode<synchronous>, transform_indices = @transform_6, window_bounds = array<i64: 128, 64>}, {pipeline_mode = #tpu.pipeline_mode<synchronous>, transform_indices = @transform_7, window_bounds = array<i64: 1, 64>}, {pipeline_mode = #tpu.pipeline_mode<synchronous>, transform_indices = @transform_8, window_bounds = array<i64: 64, 128>}, {pipeline_mode = #tpu.pipeline_mode<synchronous>, transform_indices = @transform_9, window_bounds = array<i64: 1, 128>}, {transform_indices = @transform_10, window_bounds = array<i64: 16, 128>}]} {
    %c0 = arith.constant 0 : index
    %c0_0 = arith.constant 0 : index
    %0 = vector.load %arg1[%c0, %c0_0] : memref<16x1664xbf16, #tpu.memory_space<vmem>>, vector<16x1664xbf16>
    %c0_1 = arith.constant 0 : index
    %c0_2 = arith.constant 0 : index
    %1 = vector.load %arg2[%c0_1, %c0_2] : memref<1664x64xbf16, #tpu.memory_space<vmem>>, vector<1664x64xbf16>
    %cst = arith.constant dense<0.000000e+00> : vector<16x64xf32>
    %2 = tpu.matmul %0, %1, %cst {dimension_numbers = #tpu.dot_dimension_numbers<[1], [0], [0], [1], [0, 0, 1, 1], [], []>} : vector<16x1664xbf16>, vector<1664x64xbf16>, vector<16x64xf32> -> vector<16x64xf32>
    %cst_3 = arith.constant 1.000000e-10 : f32
    %3 = vector.broadcast %cst_3 : f32 to vector<16x64xf32>
    %4 = arith.maximumf %2, %3 : vector<16x64xf32>
    %5 = math.log %4 : vector<16x64xf32>
    %6 = arith.truncf %5 : vector<16x64xf32> to vector<16x64xbf16>
    %c0_4 = arith.constant 0 : index
    %c0_5 = arith.constant 0 : index
    %7 = vector.load %arg3[%c0_4, %c0_5] : memref<64x128xbf16, #tpu.memory_space<vmem>>, vector<64x128xbf16>
    %cst_6 = arith.constant dense<0.000000e+00> : vector<16x128xf32>
    %8 = tpu.matmul %6, %7, %cst_6 {dimension_numbers = #tpu.dot_dimension_numbers<[1], [0], [0], [1], [0, 0, 1, 1], [], []>} : vector<16x64xbf16>, vector<64x128xbf16>, vector<16x128xf32> -> vector<16x128xf32>
    %c0_7 = arith.constant 0 : index
    %c0_8 = arith.constant 0 : index
    %9 = vector.load %arg4[%c0_7, %c0_8] : memref<1x128xf32, #tpu.memory_space<vmem>>, vector<1x128xf32>
    %10 = vector.broadcast %9 : vector<1x128xf32> to vector<16x128xf32>
    %11 = arith.addf %8, %10 : vector<16x128xf32>
    %cst_9 = arith.constant 0.000000e+00 : f32
    %12 = vector.broadcast %cst_9 : f32 to vector<16x128xf32>
    %13 = arith.maximumf %11, %12 : vector<16x128xf32>
    %14 = arith.truncf %13 : vector<16x128xf32> to vector<16x128xbf16>
    %c0_10 = arith.constant 0 : index
    %c0_11 = arith.constant 0 : index
    %15 = vector.load %arg5[%c0_10, %c0_11] : memref<128x128xbf16, #tpu.memory_space<vmem>>, vector<128x128xbf16>
    %cst_12 = arith.constant dense<0.000000e+00> : vector<16x128xf32>
    %16 = tpu.matmul %14, %15, %cst_12 {dimension_numbers = #tpu.dot_dimension_numbers<[1], [0], [0], [1], [0, 0, 1, 1], [], []>} : vector<16x128xbf16>, vector<128x128xbf16>, vector<16x128xf32> -> vector<16x128xf32>
    %c0_13 = arith.constant 0 : index
    %c0_14 = arith.constant 0 : index
    %17 = vector.load %arg6[%c0_13, %c0_14] : memref<1x128xf32, #tpu.memory_space<vmem>>, vector<1x128xf32>
    %18 = vector.broadcast %17 : vector<1x128xf32> to vector<16x128xf32>
    %19 = arith.addf %16, %18 : vector<16x128xf32>
    %cst_15 = arith.constant 0.000000e+00 : f32
    %20 = vector.broadcast %cst_15 : f32 to vector<16x128xf32>
    %21 = arith.maximumf %19, %20 : vector<16x128xf32>
    %22 = arith.truncf %21 : vector<16x128xf32> to vector<16x128xbf16>
    %c0_16 = arith.constant 0 : index
    %c0_17 = arith.constant 0 : index
    %23 = vector.load %arg5[%c0_16, %c0_17] : memref<128x128xbf16, #tpu.memory_space<vmem>>, vector<128x128xbf16>
    %cst_18 = arith.constant dense<0.000000e+00> : vector<16x128xf32>
    %24 = tpu.matmul %22, %23, %cst_18 {dimension_numbers = #tpu.dot_dimension_numbers<[1], [0], [0], [1], [0, 0, 1, 1], [], []>} : vector<16x128xbf16>, vector<128x128xbf16>, vector<16x128xf32> -> vector<16x128xf32>
    %c0_19 = arith.constant 0 : index
    %c0_20 = arith.constant 0 : index
    %25 = vector.load %arg6[%c0_19, %c0_20] : memref<1x128xf32, #tpu.memory_space<vmem>>, vector<1x128xf32>
    %26 = vector.broadcast %25 : vector<1x128xf32> to vector<16x128xf32>
    %27 = arith.addf %24, %26 : vector<16x128xf32>
    %cst_21 = arith.constant 0.000000e+00 : f32
    %28 = vector.broadcast %cst_21 : f32 to vector<16x128xf32>
    %29 = arith.maximumf %27, %28 : vector<16x128xf32>
    %30 = arith.truncf %29 : vector<16x128xf32> to vector<16x128xbf16>
    %c0_22 = arith.constant 0 : index
    %c0_23 = arith.constant 0 : index
    %31 = vector.load %arg7[%c0_22, %c0_23] : memref<128x64xbf16, #tpu.memory_space<vmem>>, vector<128x64xbf16>
    %cst_24 = arith.constant dense<0.000000e+00> : vector<16x64xf32>
    %32 = tpu.matmul %30, %31, %cst_24 {dimension_numbers = #tpu.dot_dimension_numbers<[1], [0], [0], [1], [0, 0, 1, 1], [], []>} : vector<16x128xbf16>, vector<128x64xbf16>, vector<16x64xf32> -> vector<16x64xf32>
    %c0_25 = arith.constant 0 : index
    %c0_26 = arith.constant 0 : index
    %33 = vector.load %arg8[%c0_25, %c0_26] : memref<1x64xf32, #tpu.memory_space<vmem>>, vector<1x64xf32>
    %34 = vector.broadcast %33 : vector<1x64xf32> to vector<16x64xf32>
    %35 = arith.addf %32, %34 : vector<16x64xf32>
    %cst_27 = arith.constant 0.000000e+00 : f32
    %36 = vector.broadcast %cst_27 : f32 to vector<16x64xf32>
    %37 = arith.maximumf %35, %36 : vector<16x64xf32>
    %38 = arith.truncf %37 : vector<16x64xf32> to vector<16x64xbf16>
    %c0_28 = arith.constant 0 : index
    %c0_29 = arith.constant 0 : index
    %39 = vector.load %arg9[%c0_28, %c0_29] : memref<64x128xbf16, #tpu.memory_space<vmem>>, vector<64x128xbf16>
    %cst_30 = arith.constant dense<0.000000e+00> : vector<16x128xf32>
    %40 = tpu.matmul %38, %39, %cst_30 {dimension_numbers = #tpu.dot_dimension_numbers<[1], [0], [0], [1], [0, 0, 1, 1], [], []>} : vector<16x64xbf16>, vector<64x128xbf16>, vector<16x128xf32> -> vector<16x128xf32>
    %c0_31 = arith.constant 0 : index
    %c0_32 = arith.constant 0 : index
    %41 = vector.load %arg10[%c0_31, %c0_32] : memref<1x128xf32, #tpu.memory_space<vmem>>, vector<1x128xf32>
    %42 = vector.broadcast %41 : vector<1x128xf32> to vector<16x128xf32>
    %43 = arith.addf %40, %42 : vector<16x128xf32>
    %cst_33 = arith.constant 0.000000e+00 : f32
    %44 = vector.broadcast %cst_33 : f32 to vector<16x128xf32>
    %45 = arith.subf %44, %43 : vector<16x128xf32>
    %46 = math.exp %45 : vector<16x128xf32>
    %cst_34 = arith.constant 1.000000e+00 : f32
    %47 = vector.broadcast %cst_34 : f32 to vector<16x128xf32>
    %48 = arith.addf %47, %46 : vector<16x128xf32>
    %cst_35 = arith.constant 1.000000e+00 : f32
    %49 = vector.broadcast %cst_35 : f32 to vector<16x128xf32>
    %50 = arith.divf %49, %48 : vector<16x128xf32>
    %51 = arith.truncf %50 : vector<16x128xf32> to vector<16x128xbf16>
    %c0_36 = arith.constant 0 : index
    %c0_37 = arith.constant 0 : index
    %52 = vector.load %arg11[%c0_36, %c0_37] : memref<16x128xbf16, #tpu.memory_space<vmem>>, vector<16x128xbf16>
    tpu.vector_store %arg11[%c0_36, %c0_37], %51 {strides = array<i32>} : memref<16x128xbf16, #tpu.memory_space<vmem>>, vector<16x128xbf16>,
    return
  }
  func.func @transform_0(%arg0: i32) -> (i32, i32) {
    %c0_i32 = arith.constant 0 : i32
    %c0_i32_0 = arith.constant 0 : i32
    return %arg0, %c0_i32 : i32, i32
  }
  func.func @transform_1(%arg0: i32) -> (i32, i32) {
    %c0_i32 = arith.constant 0 : i32
    %c0_i32_0 = arith.constant 0 : i32
    %c0_i32_1 = arith.constant 0 : i32
    return %c0_i32, %c0_i32_0 : i32, i32
  }
  func.func @transform_2(%arg0: i32) -> (i32, i32) {
    %c0_i32 = arith.constant 0 : i32
    %c0_i32_0 = arith.constant 0 : i32
    %c0_i32_1 = arith.constant 0 : i32
    return %c0_i32, %c0_i32_0 : i32, i32
  }
  func.func @transform_3(%arg0: i32) -> (i32, i32) {
    %c0_i32 = arith.constant 0 : i32
    %c0_i32_0 = arith.constant 0 : i32
    %c0_i32_1 = arith.constant 0 : i32
    return %c0_i32, %c0_i32_0 : i32, i32
  }
  func.func @transform_4(%arg0: i32) -> (i32, i32) {
    %c0_i32 = arith.constant 0 : i32
    %c0_i32_0 = arith.constant 0 : i32
    %c0_i32_1 = arith.constant 0 : i32
    return %c0_i32, %c0_i32_0 : i32, i32
  }
  func.func @transform_5(%arg0: i32) -> (i32, i32) {
    %c0_i32 = arith.constant 0 : i32
    %c0_i32_0 = arith.constant 0 : i32
    %c0_i32_1 = arith.constant 0 : i32
    return %c0_i32, %c0_i32_0 : i32, i32
  }
  func.func @transform_6(%arg0: i32) -> (i32, i32) {
    %c0_i32 = arith.constant 0 : i32
    %c0_i32_0 = arith.constant 0 : i32
    %c0_i32_1 = arith.constant 0 : i32
    return %c0_i32, %c0_i32_0 : i32, i32
  }
  func.func @transform_7(%arg0: i32) -> (i32, i32) {
    %c0_i32 = arith.constant 0 : i32
    %c0_i32_0 = arith.constant 0 : i32
    %c0_i32_1 = arith.constant 0 : i32
    return %c0_i32, %c0_i32_0 : i32, i32
  }
  func.func @transform_8(%arg0: i32) -> (i32, i32) {
    %c0_i32 = arith.constant 0 : i32
    %c0_i32_0 = arith.constant 0 : i32
    %c0_i32_1 = arith.constant 0 : i32
    return %c0_i32, %c0_i32_0 : i32, i32
  }
  func.func @transform_9(%arg0: i32) -> (i32, i32) {
    %c0_i32 = arith.constant 0 : i32
    %c0_i32_0 = arith.constant 0 : i32
    %c0_i32_1 = arith.constant 0 : i32
    return %c0_i32, %c0_i32_0 : i32, i32
  }
  func.func @transform_10(%arg0: i32) -> (i32, i32) {
    %c0_i32 = arith.constant 0 : i32
    %c0_i32_0 = arith.constant 0 : i32
    return %arg0, %c0_i32 : i32, i32
  }
}

</mosaic_0001>

<bundles_post_ra>
// kernel: tpu_custom_call.1
= control target key start
LH: loop header
LB: loop body
LE: loop exit
PB: predicated region body
PF: predicated region fallthrough
CT: control target
= control target key end

     0   :  { %vm2352_vm0 = vmmov 0   ;;  %s2932_s0 = inlined_call_operand.vmem [shape: bf16[16,1664], index: 0, kind: input, shape index: {}]   ;;  %s2933_s1 = inlined_call_operand.vmem [shape: bf16[1664,64], index: 1, kind: input, shape index: {}]   ;;  %s2934_s2 = inlined_call_operand.vmem [shape: bf16[64,128], index: 2, kind: input, shape index: {}]   ;;  %s2935_s3 = inlined_call_operand.vmem [shape: f32[1,128], index: 3, kind: input, shape index: {}]   ;;  %s2936_s4 = inlined_call_operand.vmem [shape: bf16[128,128], index: 4, kind: input, shape index: {}]   ;;  %s2937_s5 = inlined_call_operand.vmem [shape: f32[1,128], index: 5, kind: input, shape index: {}]   ;;  %s2938_s6 = inlined_call_operand.vmem [shape: bf16[128,64], index: 6, kind: input, shape index: {}]   ;;  %s2939_s7 = inlined_call_operand.vmem [shape: f32[1,64], index: 7, kind: input, shape index: {}]   ;;  %s2940_s8 = inlined_call_operand.vmem [shape: bf16[64,128], index: 8, kind: input, shape index: {}]   ;;  %s2941_s9 = inlined_call_operand.vmem [shape: f32[1,128], index: 9, kind: input, shape index: {}]   ;;  %s2942_s10 = inlined_call_operand.hbm [shape: bf16[16,128], index: 10, kind: output, shape index: {}]  }
   0x1   :  { %v2168_v0 = vld [vmem:[%s2933_s1 + $0x40] sm:$0xff]   ;;  %v2172_v4 = vld [vmem:[%s2933_s1 + $0x48] sm:$0xff]   ;;  %v2176_v8 = vld [vmem:[%s2933_s1 + $0x50] sm:$0xff]  }
   0x2   :  { %v2169_v1 = vld [vmem:[%s2933_s1 + $0xc0] sm:$0xff]   ;;  %1881 = vmatprep.subr.bf16.mxu0 %v2168_v0  ;;  %v2173_v5 = vld [vmem:[%s2933_s1 + $0xc8] sm:$0xff]   ;;  %v2177_v9 = vld [vmem:[%s2933_s1 + $0xd0] sm:$0xff]  }
   0x3   :  { %v2170_v2 = vld [vmem:[%s2933_s1] sm:$0xff]   ;;  %1903 = vmatprep.subr.bf16.mxu1 %v2169_v1  ;;  %v2174_v6 = vld [vmem:[%s2933_s1 + $0x8] sm:$0xff]   ;;  %v2178_v10 = vld [vmem:[%s2933_s1 + $0x10] sm:$0xff]  }
   0x4   :  { %v2171_v3 = vld [vmem:[%s2933_s1 + $0x80] sm:$0xff]   ;;  %1882 = vmatpush3.bf16.msra.mxu0 %v2170_v2  ;;  %v2175_v7 = vld [vmem:[%s2933_s1 + $0x88] sm:$0xff]   ;;  %v2179_v11 = vld [vmem:[%s2933_s1 + $0x90] sm:$0xff]  }
   0x5   :  { %1904 = vmatpush3.bf16.msra.mxu1 %v2171_v3  ;;  %1883 = vmatprep.subr.bf16.mxu0 %v2172_v4  ;;  %v2180_v12 = vld [vmem:[%s2933_s1 + $0x58] sm:$0xff]   ;;  %v2184_v16 = vld [vmem:[%s2933_s1 + $0x60] sm:$0xff]   ;;  %v2188_v20 = vld [vmem:[%s2933_s1 + $0x68] sm:$0xff]  }
   0x6   :  { %1905 = vmatprep.subr.bf16.mxu1 %v2173_v5  ;;  %v2181_v13 = vld [vmem:[%s2933_s1 + $0xd8] sm:$0xff]   ;;  %v2185_v17 = vld [vmem:[%s2933_s1 + $0xe0] sm:$0xff]   ;;  %v2189_v21 = vld [vmem:[%s2933_s1 + $0xe8] sm:$0xff]  }
   0x7   :  { %v2182_v14 = vld [vmem:[%s2933_s1 + $0x18] sm:$0xff]   ;;  %v2186_v18 = vld [vmem:[%s2933_s1 + $0x20] sm:$0xff]   ;;  %v2190_v22 = vld [vmem:[%s2933_s1 + $0x28] sm:$0xff]  }
   0x8   :  { %1884 = vmatpush3.bf16.msra.mxu0 %v2174_v6  ;;  %v2183_v15 = vld [vmem:[%s2933_s1 + $0x98] sm:$0xff]   ;;  %v2187_v19 = vld [vmem:[%s2933_s1 + $0xa0] sm:$0xff]   ;;  %v2191_v23 = vld [vmem:[%s2933_s1 + $0xa8] sm:$0xff]  }
   0x9   :  { %1906 = vmatpush3.bf16.msra.mxu1 %v2175_v7  ;;  %1885 = vmatprep.subr.bf16.mxu0 %v2176_v8  ;;  %v2192_v24 = vld [vmem:[%s2933_s1 + $0x70] sm:$0xff]   ;;  %v2196_v28 = vld [vmem:[%s2933_s1 + $0x78] sm:$0xff]   ;;  %v2205_v35 = vld [vmem:[%s2932_s0 + $0xc] ss:$52 sps:$4 sm:$0xff]  }
   0xa   :  { %1907 = vmatprep.subr.bf16.mxu1 %v2177_v9  ;;  %v2193_v25 = vld [vmem:[%s2933_s1 + $0xf0] sm:$0xff]   ;;  %v2197_v29 = vld [vmem:[%s2933_s1 + $0xf8] sm:$0xff]   ;;  %v2206_v36 = vld [vmem:[%s2933_s1 + $0x140] sm:$0xff]   ;;  %1022 = vmatprep.mubr.bf16.mxu1 %v2205_v35 }
   0xb   :  { %v2194_v26 = vld [vmem:[%s2933_s1 + $0x30] sm:$0xff]   ;;  %v2198_v30 = vld [vmem:[%s2933_s1 + $0x38] sm:$0xff]   ;;  %v2207_v37 = vld [vmem:[%s2933_s1 + $0x100] sm:$0xff]  }
   0xc   :  { %1886 = vmatpush3.bf16.msra.mxu0 %v2178_v10  ;;  %v2195_v27 = vld [vmem:[%s2933_s1 + $0xb0] sm:$0xff]   ;;  %v2199_v31 = vld [vmem:[%s2933_s1 + $0xb8] sm:$0xff]   ;;  %v2208_v38 = vld [vmem:[%s2933_s1 + $0x1c0] sm:$0xff]  }
   0xd   :  { %1908 = vmatpush3.bf16.msra.mxu1 %v2179_v11  ;;  %1887 = vmatprep.subr.bf16.mxu0 %v2180_v12  ;;  %v2200_v32 = vld [vmem:[%s2932_s0] ss:$52 sps:$4 sm:$0xff]   ;;  %v2202_v33 = vld [vmem:[%s2932_s0 + $0x4] ss:$52 sps:$4 sm:$0xff]   ;;  %v2203_v34 = vld [vmem:[%s2932_s0 + $0x8] ss:$52 sps:$4 sm:$0xff]  }
   0xe   :  { %1909 = vmatprep.subr.bf16.mxu1 %v2181_v13  ;;  %981 = vmatprep.mubr.bf16.mxu0 %v2202_v33  ;;  %v2209_v39 = vld [vmem:[%s2933_s1 + $0x180] sm:$0xff]   ;;  %v2210_v40 = vld [vmem:[%s2933_s1 + $0x148] sm:$0xff]   ;;  %v2214_v44 = vld [vmem:[%s2933_s1 + $0x150] sm:$0xff]  }
   0xf   :  { %v2211_v41 = vld [vmem:[%s2933_s1 + $0x108] sm:$0xff]   ;;  %v2215_v45 = vld [vmem:[%s2933_s1 + $0x110] sm:$0xff]   ;;  %v2218_v48 = vld [vmem:[%s2933_s1 + $0x158] sm:$0xff]  }
  0x10   :  { %1888 = vmatpush3.bf16.msra.mxu0 %v2182_v14  ;;  %v2212_v42 = vld [vmem:[%s2933_s1 + $0x1c8] sm:$0xff]   ;;  %v2216_v46 = vld [vmem:[%s2933_s1 + $0x1d0] sm:$0xff]   ;;  %v2219_v49 = vld [vmem:[%s2933_s1 + $0x118] sm:$0xff]  }
  0x11   :  { %1910 = vmatpush3.bf16.msra.mxu1 %v2183_v15  ;;  %1889 = vmatprep.subr.bf16.mxu0 %v2184_v16  ;;  %v2213_v43 = vld [vmem:[%s2933_s1 + $0x188] sm:$0xff]   ;;  %v2217_v47 = vld [vmem:[%s2933_s1 + $0x190] sm:$0xff]   ;;  %v2220_v50 = vld [vmem:[%s2933_s1 + $0x1d8] sm:$0xff]  }
  0x12   :  { %1911 = vmatprep.subr.bf16.mxu1 %v2185_v17  ;;  %v2221_v51 = vld [vmem:[%s2933_s1 + $0x198] sm:$0xff]   ;;  %v2222_v52 = vld [vmem:[%s2933_s1 + $0x160] sm:$0xff]   ;;  %v2226_v56 = vld [vmem:[%s2933_s1 + $0x168] sm:$0xff]  }
  0x13   :  { %v2223_v53 = vld [vmem:[%s2933_s1 + $0x120] sm:$0xff]   ;;  %v2227_v57 = vld [vmem:[%s2933_s1 + $0x128] sm:$0xff]   ;;  %v2230_v60 = vld [vmem:[%s2933_s1 + $0x170] sm:$0xff]  }
  0x14   :  { %1890 = vmatpush3.bf16.msra.mxu0 %v2186_v18  ;;  %v2224_v54 = vld [vmem:[%s2933_s1 + $0x1e0] sm:$0xff]   ;;  %v2228_v58 = vld [vmem:[%s2933_s1 + $0x1e8] sm:$0xff]   ;;  %v2231_v61 = vld [vmem:[%s2933_s1 + $0x130] sm:$0xff]  }
  0x15   :  { %1912 = vmatpush3.bf16.msra.mxu1 %v2187_v19  ;;  %1891 = vmatprep.subr.bf16.mxu0 %v2188_v20  ;;  %v2225_v55 = vld [vmem:[%s2933_s1 + $0x1a0] sm:$0xff]   ;;  %v2229_v59 = vld [vmem:[%s2933_s1 + $0x1a8] sm:$0xff]   ;;  %v2232_v62 = vld [vmem:[%s2933_s1 + $0x1f0] sm:$0xff]  }
  0x16   :  { %1913 = vmatprep.subr.bf16.mxu1 %v2189_v21  ;;  %v2233_v63 = vld [vmem:[%s2933_s1 + $0x1b0] sm:$0xff]   ;;  %v2234_v0 = vld [vmem:[%s2933_s1 + $0x178] sm:$0xff]   ;;  %v2241_v6 = vld [vmem:[%s2933_s1 + $0x240] sm:$0xff]  }
  0x17   :  { %v2235_v1 = vld [vmem:[%s2933_s1 + $0x138] sm:$0xff]   ;;  %v2237_v3 = vld [vmem:[%s2932_s0 + $0x10] ss:$52 sps:$4 sm:$0xff]   ;;  %v2239_v4 = vld [vmem:[%s2932_s0 + $0x14] ss:$52 sps:$4 sm:$0xff]  }
  0x18   :  { %1892 = vmatpush3.bf16.msra.mxu0 %v2190_v22  ;;  %v2236_v2 = vld [vmem:[%s2933_s1 + $0x1f8] sm:$0xff]   ;;  %v2245_v9 = vld [vmem:[%s2933_s1 + $0x200] sm:$0xff]   ;;  %v2248_v12 = vld [vmem:[%s2933_s1 + $0x248] sm:$0xff]  }
  0x19   :  { %1914 = vmatpush3.bf16.msra.mxu1 %v2191_v23  ;;  %1893 = vmatprep.subr.bf16.mxu0 %v2192_v24  ;;  %v2240_v5 = vld [vmem:[%s2933_s1 + $0x1b8] sm:$0xff]   ;;  %v2246_v10 = vld [vmem:[%s2933_s1 + $0x2c0] sm:$0xff]   ;;  %v2249_v13 = vld [vmem:[%s2933_s1 + $0x208] sm:$0xff]  }
  0x1a   :  { %1915 = vmatprep.subr.bf16.mxu1 %v2193_v25  ;;  %v2242_v7 = vld [vmem:[%s2932_s0 + $0x18] ss:$52 sps:$4 sm:$0xff]   ;;  %v2244_v8 = vld [vmem:[%s2932_s0 + $0x1c] ss:$52 sps:$4 sm:$0xff]   ;;  %v2247_v11 = vld [vmem:[%s2933_s1 + $0x280] sm:$0xff]  }
  0x1b   :  { %v2250_v14 = vld [vmem:[%s2933_s1 + $0x2c8] sm:$0xff]   ;;  %v2252_v16 = vld [vmem:[%s2933_s1 + $0x250] sm:$0xff]   ;;  %v2256_v20 = vld [vmem:[%s2933_s1 + $0x258] sm:$0xff]  }
  0x1c   :  { %1894 = vmatpush3.bf16.msra.mxu0 %v2194_v26  ;;  %v2251_v15 = vld [vmem:[%s2933_s1 + $0x288] sm:$0xff]   ;;  %v2253_v17 = vld [vmem:[%s2933_s1 + $0x210] sm:$0xff]   ;;  %v2257_v21 = vld [vmem:[%s2933_s1 + $0x218] sm:$0xff]  }
  0x1d   :  { %1916 = vmatpush3.bf16.msra.mxu1 %v2195_v27  ;;  %1895 = vmatprep.subr.bf16.mxu0 %v2196_v28  ;;  %v2254_v18 = vld [vmem:[%s2933_s1 + $0x2d0] sm:$0xff]   ;;  %v2258_v22 = vld [vmem:[%s2933_s1 + $0x2d8] sm:$0xff]   ;;  %v2260_v24 = vld [vmem:[%s2933_s1 + $0x260] sm:$0xff]  }
  0x1e   :  { %1917 = vmatprep.subr.bf16.mxu1 %v2197_v29  ;;  %v2255_v19 = vld [vmem:[%s2933_s1 + $0x290] sm:$0xff]   ;;  %v2259_v23 = vld [vmem:[%s2933_s1 + $0x298] sm:$0xff]   ;;  %v2261_v25 = vld [vmem:[%s2933_s1 + $0x220] sm:$0xff]  }
  0x1f   :  { %v2262_v26 = vld [vmem:[%s2933_s1 + $0x2e0] sm:$0xff]   ;;  %v2264_v28 = vld [vmem:[%s2933_s1 + $0x268] sm:$0xff]   ;;  %v2269_v33 = vld [vmem:[%s2933_s1 + $0x230] sm:$0xff]  }
  0x20   :  { %1896 = vmatpush3.bf16.msra.mxu0 %v2198_v30  ;;  %v2263_v27 = vld [vmem:[%s2933_s1 + $0x2a0] sm:$0xff]   ;;  %v2265_v29 = vld [vmem:[%s2933_s1 + $0x228] sm:$0xff]   ;;  %v2271_v35 = vld [vmem:[%s2933_s1 + $0x2b0] sm:$0xff]  }
  0x21   :  { %1918 = vmatpush3.bf16.msra.mxu1 %v2199_v31  ;;  %1925 = vmatprep.subr.bf16.mxu0 %v2206_v36  ;;  %v2266_v30 = vld [vmem:[%s2933_s1 + $0x2e8] sm:$0xff]   ;;  %v2272_v36 = vld [vmem:[%s2933_s1 + $0x278] sm:$0xff]  }
  0x22   :  { %1947 = vmatprep.subr.bf16.mxu1 %v2208_v38  ;;  %v2267_v31 = vld [vmem:[%s2933_s1 + $0x2a8] sm:$0xff]   ;;  %v2274_v38 = vld [vmem:[%s2933_s1 + $0x2f8] sm:$0xff]  }
  0x23   :  { %982 = vmatmul.mubr.bf16.vlgmr.msra.gmra.mrb[0].mxu0 %v2200_v32  ;;  %v2268_v32 = vld [vmem:[%s2933_s1 + $0x270] sm:$0xff]  }
  0x24   :  { %1023 = vmatmul.mubr.bf16.vlgmr.msra.gmra.mrb[0].mxu1 %v2203_v34  ;;  %1926 = vmatpush3.bf16.msra.mxu0 %v2207_v37  ;;  %v2270_v34 = vld [vmem:[%s2933_s1 + $0x2f0] sm:$0xff]   ;;  %v2273_v37 = vld [vmem:[%s2933_s1 + $0x238] sm:$0xff]  }
  0x25   :  { %1948 = vmatpush3.bf16.msra.mxu1 %v2209_v39  ;;  %1927 = vmatprep.subr.bf16.mxu0 %v2210_v40  ;;  %v2275_v39 = vld [vmem:[%s2932_s0 + $0x20] ss:$52 sps:$4 sm:$0xff]   ;;  %v2277_v40 = vld [vmem:[%s2932_s0 + $0x24] ss:$52 sps:$4 sm:$0xff]  }
  0x26   :  { %1949 = vmatprep.subr.bf16.mxu1 %v2212_v42  ;;  %1063 = vmatprep.mubr.bf16.mxu0 %v2239_v4  ;;  %v2351_v42 = vmov 0.0  }
  0x27   :  { %1104 = vmatprep.mubr.bf16.mxu1 %v2244_v8 }
  0x28   :  { %1928 = vmatpush3.bf16.msra.mxu0 %v2211_v41  ;;  %v2278_v41 = vld [vmem:[%s2933_s1 + $0x2b8] sm:$0xff]  }
  0x29   :  { %1950 = vmatpush3.bf16.msra.mxu1 %v2213_v43  ;;  %1929 = vmatprep.subr.bf16.mxu0 %v2214_v44  ;;  %v2279_v43 = vld [vmem:[%s2932_s0 + $0x28] ss:$52 sps:$4 sm:$0xff]   ;;  %v2281_v44 = vld [vmem:[%s2932_s0 + $0x2c] ss:$52 sps:$4 sm:$0xff]  }
  0x2a   :  { %1951 = vmatprep.subr.bf16.mxu1 %v2216_v46  ;;  %v2283_v46 = vld [vmem:[%s2933_s1 + $0x308] sm:$0xff]  }
  0x2c   :  { %1930 = vmatpush3.bf16.msra.mxu0 %v2215_v45  ;;  %v2282_v45 = vld [vmem:[%s2933_s1 + $0x300] sm:$0xff]  }
  0x2d   :  { %1952 = vmatpush3.bf16.msra.mxu1 %v2217_v47  ;;  %1931 = vmatprep.subr.bf16.mxu0 %v2218_v48  ;;  %v2284_v47 = vld [vmem:[%s2933_s1 + $0x310] sm:$0xff]   ;;  %v2285_v48 = vld [vmem:[%s2933_s1 + $0x318] sm:$0xff]  }
  0x2e   :  { %1953 = vmatprep.subr.bf16.mxu1 %v2220_v50  ;;  %v2287_v50 = vld [vmem:[%s2933_s1 + $0x328] sm:$0xff]  }
  0x30   :  { %1932 = vmatpush3.bf16.msra.mxu0 %v2219_v49  ;;  %v2286_v49 = vld [vmem:[%s2933_s1 + $0x320] sm:$0xff]  }
  0x31   :  { %1954 = vmatpush3.bf16.msra.mxu1 %v2221_v51  ;;  %1933 = vmatprep.subr.bf16.mxu0 %v2222_v52  ;;  %v2288_v51 = vld [vmem:[%s2933_s1 + $0x330] sm:$0xff]  }
  0x32   :  { %1955 = vmatprep.subr.bf16.mxu1 %v2224_v54 }
  0x34   :  { %1934 = vmatpush3.bf16.msra.mxu0 %v2223_v53 }
  0x35   :  { %1956 = vmatpush3.bf16.msra.mxu1 %v2225_v55  ;;  %1935 = vmatprep.subr.bf16.mxu0 %v2226_v56 }
  0x36   :  { %1957 = vmatprep.subr.bf16.mxu1 %v2228_v58 }
  0x38   :  { %1936 = vmatpush3.bf16.msra.mxu0 %v2227_v57 }
  0x39   :  { %1958 = vmatpush3.bf16.msra.mxu1 %v2229_v59  ;;  %1937 = vmatprep.subr.bf16.mxu0 %v2230_v60 }
  0x3a   :  { %1959 = vmatprep.subr.bf16.mxu1 %v2232_v62 }
  0x3c   :  { %1938 = vmatpush3.bf16.msra.mxu0 %v2231_v61 }
  0x3d   :  { %1960 = vmatpush3.bf16.msra.mxu1 %v2233_v63  ;;  %1939 = vmatprep.subr.bf16.mxu0 %v2234_v0 }
  0x3e   :  { %1961 = vmatprep.subr.bf16.mxu1 %v2236_v2 }
  0x40   :  { %1940 = vmatpush3.bf16.msra.mxu0 %v2235_v1 }
  0x41   :  { %1962 = vmatpush3.bf16.msra.mxu1 %v2240_v5  ;;  %1969 = vmatprep.subr.bf16.mxu0 %v2241_v6 }
  0x42   :  { %1991 = vmatprep.subr.bf16.mxu1 %v2246_v10 }
  0x43   :  { %1064 = vmatmul.mubr.bf16.vlgmr.msra.gmra.mrb[4].mxu0 %v2237_v3 }
  0x44   :  { %1970 = vmatpush3.bf16.msra.mxu0 %v2245_v9  ;;  %1105 = vmatmul.mubr.bf16.vlgmr.msra.gmra.mrb[4].mxu1 %v2242_v7 }
  0x45   :  { %1992 = vmatpush3.bf16.msra.mxu1 %v2247_v11  ;;  %1971 = vmatprep.subr.bf16.mxu0 %v2248_v12 }
  0x46   :  { %1993 = vmatprep.subr.bf16.mxu1 %v2250_v14  ;;  %1145 = vmatprep.mubr.bf16.mxu0 %v2277_v40 }
  0x47   :  { %1186 = vmatprep.mubr.bf16.mxu1 %v2281_v44 }
  0x48   :  { %1972 = vmatpush3.bf16.msra.mxu0 %v2249_v13 }
  0x49   :  { %1994 = vmatpush3.bf16.msra.mxu1 %v2251_v15  ;;  %1973 = vmatprep.subr.bf16.mxu0 %v2252_v16 }
  0x4a   :  { %1995 = vmatprep.subr.bf16.mxu1 %v2254_v18 }
  0x4c   :  { %1974 = vmatpush3.bf16.msra.mxu0 %v2253_v17 }
  0x4d   :  { %1996 = vmatpush3.bf16.msra.mxu1 %v2255_v19  ;;  %1975 = vmatprep.subr.bf16.mxu0 %v2256_v20 }
  0x4e   :  { %1997 = vmatprep.subr.bf16.mxu1 %v2258_v22 }
  0x50   :  { %1976 = vmatpush3.bf16.msra.mxu0 %v2257_v21 }
  0x51   :  { %1998 = vmatpush3.bf16.msra.mxu1 %v2259_v23  ;;  %1977 = vmatprep.subr.bf16.mxu0 %v2260_v24 }
  0x52   :  { %1999 = vmatprep.subr.bf16.mxu1 %v2262_v26 }
  0x54   :  { %1978 = vmatpush3.bf16.msra.mxu0 %v2261_v25 }
  0x55   :  { %2000 = vmatpush3.bf16.msra.mxu1 %v2263_v27  ;;  %1979 = vmatprep.subr.bf16.mxu0 %v2264_v28 }
  0x56   :  { %2001 = vmatprep.subr.bf16.mxu1 %v2266_v30 }
  0x58   :  { %1980 = vmatpush3.bf16.msra.mxu0 %v2265_v29 }
  0x59   :  { %2002 = vmatpush3.bf16.msra.mxu1 %v2267_v31  ;;  %1981 = vmatprep.subr.bf16.mxu0 %v2268_v32 }
  0x5a   :  { %2003 = vmatprep.subr.bf16.mxu1 %v2270_v34 }
  0x5c   :  { %1982 = vmatpush3.bf16.msra.mxu0 %v2269_v33 }
  0x5d   :  { %2004 = vmatpush3.bf16.msra.mxu1 %v2271_v35  ;;  %1983 = vmatprep.subr.bf16.mxu0 %v2272_v36 }
  0x5e   :  { %2005 = vmatprep.subr.bf16.mxu1 %v2274_v38 }
  0x60   :  { %1984 = vmatpush3.bf16.msra.mxu0 %v2273_v37 }
  0x61   :  { %2059 = vmatprep.subr.bf16.mxu0 %v2351_v42  ;;  %2006 = vmatpush3.bf16.msra.mxu1 %v2278_v41 }
  0x62   :  { %2079 = vmatprep.subr.bf16.mxu1 %v2351_v42 }
  0x63   :  { %1146 = vmatmul.mubr.bf16.vlgmr.msra.gmra.mrb[8].mxu0 %v2275_v39 }
  0x64   :  { %2075 = vmatprep.mubr.msk.bf16.mxu0 %vm2352_vm0, %v2351_v42  ;;  %2060 = vmatpush3.bf16.msra.mxu0 %v2282_v45 }
  0x65   :  { %1187 = vmatmul.mubr.bf16.vlgmr.msra.gmra.mrb[8].mxu1 %v2279_v43  ;;  %2061 = vmatprep.subr.bf16.mxu0 %v2351_v42 }
  0x66   :  { %2087 = vmatprep.mubr.msk.bf16.mxu1 %vm2352_vm0, %v2351_v42 }
  0x68   :  { %2062 = vmatpush3.bf16.msra.mxu0 %v2283_v46 }
  0x69   :  { %2063 = vmatprep.subr.bf16.mxu0 %v2351_v42 }
  0x6c   :  { %2064 = vmatpush3.bf16.msra.mxu0 %v2284_v47 }
  0x6d   :  { %2065 = vmatprep.subr.bf16.mxu0 %v2351_v42 }
  0x70   :  { %2066 = vmatpush3.bf16.msra.mxu0 %v2285_v48 }
  0x71   :  { %2067 = vmatprep.subr.bf16.mxu0 %v2351_v42 }
  0x74   :  { %2068 = vmatpush3.bf16.msra.mxu0 %v2286_v49 }
  0x75   :  { %2069 = vmatprep.subr.bf16.mxu0 %v2351_v42 }
  0x78   :  { %2070 = vmatpush3.bf16.msra.mxu0 %v2287_v50 }
  0x79   :  { %2071 = vmatprep.subr.bf16.mxu0 %v2351_v42 }
  0x7a   :  { %15 = vsyncpa [#allocation3], 0  ;;  %v2289_v52 = vld [vmem:[%s2933_s1 + $0x338] sm:$0xff]   ;;  %v2290_v53 = vld [vmem:[%s2932_s0 + $0x30] ss:$52 sps:$4 sm:$0xff]   ;;  %vm1282_vm1 = vcmask 523264  }
  0x7b   :  { %v2291_v54 = vld [vmem:[%s2934_s2] sm:$0xff]   ;;  %v2292_v55 = vld [vmem:[%s2934_s2 + $0x8] sm:$0xff]   ;;  %v2293_v56 = vld [vmem:[%s2934_s2 + $0x10] sm:$0xff]  }
  0x7c   :  { %2072 = vmatpush3.bf16.msra.mxu0 %v2288_v51  ;;  %2080 = vmatpush3.bf16.msra.mxu1 %v2291_v54  ;;  %v2294_v57 = vld [vmem:[%s2934_s2 + $0x18] sm:$0xff]   ;;  %v2797_v58 = vld [vmem:[%s2936_s4] sm:$0xff]   ;;  %v2804_v59 = vld [vmem:[%s2936_s4 + $0x8] sm:$0xff]  }
  0x7d   :  { %2073 = vmatprep.subr.bf16.mxu0 %v2351_v42  ;;  %2081 = vmatprep.subr.bf16.mxu1 %v2351_v42  ;;  %v2811_v5 = vld [vmem:[%s2936_s4 + $0x10] sm:$0xff]   ;;  %v2818_v11 = vld [vmem:[%s2936_s4 + $0x18] sm:$0xff]   ;;  %v2825_v12 = vld [vmem:[%s2936_s4 + $0x20] sm:$0xff]  }
  0x7e   :  { %v2300_v13 = vld [vmem:[%s2936_s4 + $0x28] sm:$0xff]  }
  0x80   :  { %2074 = vmatpush3.bf16.msra.mxu0 %v2289_v52  ;;  %2082 = vmatpush3.bf16.msra.mxu1 %v2292_v55 }
  0x81   :  { %2111 = vmatprep.subr.bf16.mxu0 %v2351_v42  ;;  %2083 = vmatprep.subr.bf16.mxu1 %v2351_v42 }
  0x83   :  { %2076 = vmatmul.mubr.bf16.vlgmr.msra.gmra.mrb[12].mxu0 %v2290_v53 }
  0x84   :  { %2127 = vmatprep.mubr.msk.bf16.mxu0 %vm2352_vm0, %v2351_v42  ;;  %2084 = vmatpush3.bf16.msra.mxu1 %v2293_v56 }
  0x85   :  { %2085 = vmatprep.subr.bf16.mxu1 %v2351_v42  ;;  %2112 = vmatpush3.bf16.msra.mxu0 %v2797_v58 }
  0x86   :  { %2113 = vmatprep.subr.bf16.mxu0 %v2351_v42 }
  0x88   :  { %2086 = vmatpush3.bf16.msra.mxu1 %v2294_v57 }
  0x89   :  { %2091 = vmatprep.subr.bf16.mxu1 %v2351_v42  ;;  %2114 = vmatpush3.bf16.msra.mxu0 %v2804_v59 }
  0x8a   :  { %2115 = vmatprep.subr.bf16.mxu0 %v2351_v42 }
  0x8d   :  { %2116 = vmatpush3.bf16.msra.mxu0 %v2811_v5 }
  0x8e   :  { %2117 = vmatprep.subr.bf16.mxu0 %v2351_v42 }
  0x91   :  { %2118 = vmatpush3.bf16.msra.mxu0 %v2818_v11 }
  0x92   :  { %2119 = vmatprep.subr.bf16.mxu0 %v2351_v42 }
  0x95   :  { %2120 = vmatpush3.bf16.msra.mxu0 %v2825_v12 }
  0x96   :  { %2121 = vmatprep.subr.bf16.mxu0 %v2351_v42 }
  0x99   :  { %2122 = vmatpush3.bf16.msra.mxu0 %v2300_v13 }
  0x9a   :  { %2123 = vmatprep.subr.bf16.mxu0 %v2351_v42 }
  0xf6   :  { %v1897_v60 = vpop.f32.mrb[0].mxu0 }
  0xf7   :  { %v1919_v61 = vpop.f32.mrb[0].mxu1  ;;  %v1898_v62 = vpop.f32.mrb[1].mxu0 }
  0xf8   :  { %v1899_v63 = vadd.f32 %v1898_v62, %v1897_v60  ;;  %v1920_v0 = vpop.f32.mrb[1].mxu1  ;;  %v1900_v1 = vpop.f32.mrb[2].mxu0  ;;  %v1842_v62 = vld [vmem:[%s2935_s3] ss:$0 sm:$0xff] }
  0xf9   :  { %v1921_v2 = vadd.f32 %v1920_v0, %v1919_v61  ;;  %v1922_v3 = vpop.f32.mrb[2].mxu1  ;;  %v1901_v4 = vpop.f32.mrb[3].mxu0 }
  0xfa   :  { %v1902_v6 = vadd.f32 %v1901_v4, %v1900_v1  ;;  %v1923_v7 = vpop.f32.mrb[3].mxu1 }
  0xfb   :  { %v1025_v8 = vadd.f32 %v1921_v2, %v1899_v63  ;;  %v1924_v9 = vadd.f32 %v1923_v7, %v1922_v3 }
  0xfd   :  { %v1028_v10 = vadd.f32 %v1924_v9, %v1902_v6  ;;  %v2304_v9 = vld [vmem:[%s2938_s6 + $0x8] sm:$0xff]  }
 0x116   :  { %v1941_v14 = vpop.f32.mrb[4].mxu0 }
 0x117   :  { %v1942_v15 = vpop.f32.mrb[5].mxu0  ;;  %v1963_v20 = vpop.f32.mrb[4].mxu1 }
 0x118   :  { %v1943_v16 = vadd.f32 %v1942_v15, %v1941_v14  ;;  %v1944_v17 = vpop.f32.mrb[6].mxu0  ;;  %v1964_v22 = vpop.f32.mrb[5].mxu1  ;;  %v1848_v14 = vld [vmem:[%s2937_s5] ss:$0 sm:$0xff] }
 0x119   :  { %v1945_v18 = vpop.f32.mrb[7].mxu0  ;;  %v1965_v24 = vadd.f32 %v1964_v22, %v1963_v20  ;;  %v1966_v25 = vpop.f32.mrb[6].mxu1 }
 0x11a   :  { %v1066_v19 = vadd.f32 %v1943_v16, %v1025_v8  ;;  %v1946_v21 = vadd.f32 %v1945_v18, %v1944_v17  ;;  %v1967_v26 = vpop.f32.mrb[7].mxu1  ;;  %v2303_v8 = vld [vmem:[%s2938_s6] sm:$0xff]  }
 0x11b   :  { %v1968_v28 = vadd.f32 %v1967_v26, %v1966_v25  ;;  %v2310_v25 = vld [vmem:[%s2938_s6 + $0x38] sm:$0xff]   ;;  %v2311_v26 = vld [vmem:[%s2940_s8] sm:$0xff]  }
 0x11c   :  { %v1069_v23 = vadd.f32 %v1946_v21, %v1028_v10  ;;  %v1107_v27 = vadd.f32 %v1965_v24, %v1066_v19  ;;  %v2305_v10 = vld [vmem:[%s2938_s6 + $0x10] sm:$0xff]  }
 0x11d   :  { %v2309_v24 = vld [vmem:[%s2938_s6 + $0x30] sm:$0xff]  }
 0x11e   :  { %v1110_v29 = vadd.f32 %v1968_v28, %v1069_v23 }
 0x136   :  { %v1985_v30 = vpop.f32.mrb[8].mxu0 }
 0x137   :  { %v1986_v31 = vpop.f32.mrb[9].mxu0 }
 0x138   :  { %v1987_v32 = vadd.f32 %v1986_v31, %v1985_v30  ;;  %v1988_v33 = vpop.f32.mrb[10].mxu0  ;;  %v2007_v34 = vpop.f32.mrb[8].mxu1 }
 0x139   :  { %v1989_v35 = vpop.f32.mrb[11].mxu0  ;;  %v2008_v38 = vpop.f32.mrb[9].mxu1 }
 0x13a   :  { %v1148_v36 = vadd.f32 %v1987_v32, %v1107_v27  ;;  %v1990_v37 = vadd.f32 %v1989_v35, %v1988_v33  ;;  %v2009_v39 = vadd.f32 %v2008_v38, %v2007_v34  ;;  %v2010_v40 = vpop.f32.mrb[10].mxu1  ;;  %v2312_v27 = vld [vmem:[%s2940_s8 + $0x8] sm:$0xff]   ;;  %v2314_v38 = vld [vmem:[%s2940_s8 + $0x18] sm:$0xff]  }
 0x13b   :  { %v2011_v43 = vpop.f32.mrb[11].mxu1 }
 0x13c   :  { %v1151_v41 = vadd.f32 %v1990_v37, %v1110_v29  ;;  %v2012_v44 = vadd.f32 %v2011_v43, %v2010_v40  ;;  %v1189_v45 = vadd.f32 %v2009_v39, %v1148_v36  ;;  %v2313_v37 = vld [vmem:[%s2940_s8 + $0x10] sm:$0xff]   ;;  %v1857_v39 = vld [vmem:[%s2939_s7] ss:$0 sm:$0xff]  ;;  %s2353_s7 = smov [#allocation2]  }
 0x13d   :  { %s1714_s8 = sshll.u32 %s2353_s7, 4  ;;  %s1715_s8 = int_to_ptr.vmem [resolvable:$true] %s1714_s8 }
 0x13e   :  { %v1192_v46 = vadd.f32 %v2012_v44, %v1151_v41  ;;  %p2332_p1 = scmp.lt.s32.totalorder %s1715_s8, %s1715_s8 }
 0x156   :  { %v1229_v47 = vpop.f32.mrb[12].mxu0 }
 0x157   :  { %v1230_v48 = vadd.f32 %v1229_v47, %v1189_v45  ;;  %v2077_v49 = vpop.f32.mrb[13].mxu0 }
 0x158   :  { %v1232_v50 = vpop.f32.mrb[14].mxu0 }
 0x159   :  { %v1236_v51 = vmax.f32 %v1230_v48, 1e-10  ;;  %v1233_v52 = vadd.f32 %v1232_v50, %v1192_v46  ;;  %v2078_v53 = vpop.f32.mrb[15].mxu0 }
 0x15b   :  { %2315 = vlog2.f32 %v1236_v51  ;;  %v1237_v54 = vmax.f32 %v1233_v52, 1e-10 }
 0x15d   :  { %2317 = vlog2.f32 %v1237_v54 }
 0x165   :  { %v2316_v55 = vpop.eup %2315 }
 0x166   :  { %v1239_v57 = vmul.f32 0.6931472, %v2316_v55 }
 0x167   :  { %v2318_v56 = vpop.eup %2317 }
 0x168   :  { %v1241_v60 = vmul.f32 0.6931472, %v2318_v56 }
 0x16a   :  { %v1242_v61 = vpack.c.bf16 %v1241_v60, %v1239_v57 }
 0x16c   :  { %2088 = vmatmul.mubr.msk.bf16.vlgmr.msra.gmra.mrb[12].mxu1 %vm1282_vm1, %v1242_v61 }
 0x16d   :  { %2092 = vmatpush3.bf16.msra.mxu1 %v2797_v58  ;;  %2107 = vmatprep.mubr.msk.bf16.mxu1 %vm2352_vm0, %v2351_v42  ;;  %v2301_v58 = vld [vmem:[%s2936_s4 + $0x30] sm:$0xff]  }
 0x16e   :  { %2093 = vmatprep.subr.bf16.mxu1 %v2351_v42  ;;  %2124 = vmatpush3.bf16.msra.mxu0 %v2301_v58 }
 0x16f   :  { %2125 = vmatprep.subr.bf16.mxu0 %v2351_v42 }
 0x171   :  { %2094 = vmatpush3.bf16.msra.mxu1 %v2804_v59  ;;  %v2302_v59 = vld [vmem:[%s2936_s4 + $0x38] sm:$0xff]  }
 0x172   :  { %2095 = vmatprep.subr.bf16.mxu1 %v2351_v42  ;;  %2126 = vmatpush3.bf16.msra.mxu0 %v2302_v59 }
 0x173   :  { %2151 = vmatprep.subr.bf16.mxu0 %v2351_v42 }
 0x175   :  { %2096 = vmatpush3.bf16.msra.mxu1 %v2811_v5 }
 0x176   :  { %2097 = vmatprep.subr.bf16.mxu1 %v2351_v42 }
 0x179   :  { %2098 = vmatpush3.bf16.msra.mxu1 %v2818_v11  ;;  %v2306_v11 = vld [vmem:[%s2938_s6 + $0x18] sm:$0xff]  }
 0x17a   :  { %2099 = vmatprep.subr.bf16.mxu1 %v2351_v42 }
 0x17d   :  { %2100 = vmatpush3.bf16.msra.mxu1 %v2825_v12  ;;  %v2307_v12 = vld [vmem:[%s2938_s6 + $0x20] sm:$0xff]  }
 0x17e   :  { %2101 = vmatprep.subr.bf16.mxu1 %v2351_v42 }
 0x181   :  { %2102 = vmatpush3.bf16.msra.mxu1 %v2300_v13  ;;  %v2308_v13 = vld [vmem:[%s2938_s6 + $0x28] sm:$0xff]  }
 0x182   :  { %2103 = vmatprep.subr.bf16.mxu1 %v2351_v42 }
 0x185   :  { %2104 = vmatpush3.bf16.msra.mxu1 %v2301_v58 }
 0x186   :  { %2105 = vmatprep.subr.bf16.mxu1 %v2351_v42 }
 0x189   :  { %2106 = vmatpush3.bf16.msra.mxu1 %v2302_v59 }
 0x18a   :  { %2131 = vmatprep.subr.bf16.mxu1 %v2351_v42 }
 0x23f   :  { %v1320_v63 = vpop.f32.mrb[12].mxu1 }
 0x240   :  { %v1321_v0 = vadd.f32 %v1842_v62, %v1320_v63  ;;  %v2089_v1 = vpop.f32.mrb[13].mxu1 }
 0x241   :  { %v1323_v2 = vpop.f32.mrb[14].mxu1 }
 0x242   :  { %v1324_v3 = vadd.f32 %v1842_v62, %v1323_v2  ;;  %v2090_v4 = vpop.f32.mrb[15].mxu1  ;;  %v1327_v5 = vmax.f32 %v1321_v0, 0.0 }
 0x244   :  { %v1328_v6 = vmax.f32 %v1324_v3, 0.0 }
 0x246   :  { %v1329_v7 = vpack.c.bf16 %v1328_v6, %v1327_v5 }
 0x248   :  { %2108 = vmatmul.mubr.bf16.vlgmr.msra.gmra.mrb[16].mxu1 %v1329_v7 }
 0x249   :  { %2147 = vmatprep.mubr.msk.bf16.mxu1 %vm2352_vm0, %v2351_v42  ;;  %2132 = vmatpush3.bf16.msra.mxu1 %v2303_v8 }
 0x24a   :  { %2133 = vmatprep.subr.bf16.mxu1 %v2351_v42 }
 0x24d   :  { %2134 = vmatpush3.bf16.msra.mxu1 %v2304_v9 }
 0x24e   :  { %2135 = vmatprep.subr.bf16.mxu1 %v2351_v42 }
 0x251   :  { %2136 = vmatpush3.bf16.msra.mxu1 %v2305_v10 }
 0x252   :  { %2137 = vmatprep.subr.bf16.mxu1 %v2351_v42 }
 0x255   :  { %2138 = vmatpush3.bf16.msra.mxu1 %v2306_v11 }
 0x256   :  { %2139 = vmatprep.subr.bf16.mxu1 %v2351_v42 }
 0x259   :  { %2140 = vmatpush3.bf16.msra.mxu1 %v2307_v12 }
 0x25a   :  { %2141 = vmatprep.subr.bf16.mxu1 %v2351_v42 }
 0x25d   :  { %2142 = vmatpush3.bf16.msra.mxu1 %v2308_v13 }
 0x25e   :  { %2143 = vmatprep.subr.bf16.mxu1 %v2351_v42 }
 0x261   :  { %2144 = vmatpush3.bf16.msra.mxu1 %v2309_v24 }
 0x262   :  { %2145 = vmatprep.subr.bf16.mxu1 %v2351_v42 }
 0x265   :  { %2146 = vmatpush3.bf16.msra.mxu1 %v2310_v25 }
 0x31b   :  { %v1435_v15 = vpop.f32.mrb[16].mxu1 }
 0x31c   :  { %v1436_v16 = vadd.f32 %v1848_v14, %v1435_v15  ;;  %v2109_v17 = vpop.f32.mrb[17].mxu1 }
 0x31d   :  { %v1438_v18 = vpop.f32.mrb[18].mxu1 }
 0x31e   :  { %v1439_v19 = vadd.f32 %v1848_v14, %v1438_v18  ;;  %v2110_v20 = vpop.f32.mrb[19].mxu1  ;;  %v1442_v21 = vmax.f32 %v1436_v16, 0.0 }
 0x320   :  { %v1443_v22 = vmax.f32 %v1439_v19, 0.0 }
 0x322   :  { %v1444_v23 = vpack.c.bf16 %v1443_v22, %v1442_v21 }
 0x324   :  { %2128 = vmatmul.mubr.bf16.vlgmr.msra.gmra.mrb[16].mxu0 %v1444_v23 }
 0x325   :  { %2159 = vmatprep.mubr.msk.bf16.mxu0 %vm2352_vm0, %v2351_v42  ;;  %2152 = vmatpush3.bf16.msra.mxu0 %v2311_v26 }
 0x326   :  { %2153 = vmatprep.subr.bf16.mxu0 %v2351_v42 }
 0x329   :  { %2154 = vmatpush3.bf16.msra.mxu0 %v2312_v27 }
 0x32a   :  { %2155 = vmatprep.subr.bf16.mxu0 %v2351_v42 }
 0x32d   :  { %2156 = vmatpush3.bf16.msra.mxu0 %v2313_v37 }
 0x32e   :  { %2157 = vmatprep.subr.bf16.mxu0 %v2351_v42  ;;  %v1866_v42 = vld [vmem:[%s2941_s9] ss:$0 sm:$0xff]  ;;  %s2327_s9 = scalar_lea.vmem %s1715_s8, 128 }
 0x32f   :  { %p2328_p0 = scmp.ne.s32.totalorder %s1715_s8, %s2327_s9  ;;  %p2333_p2 = scmp.lt.s32.totalorder %s2327_s9, %s2327_s9 }
 0x331   :  { %2158 = vmatpush3.bf16.msra.mxu0 %v2314_v38  ;;  %p2334_p3 = por %p2333_p2, %p2332_p1 }
 0x333   :  { %p2335_p4 = pnand %p2334_p3, %p2328_p0 }
 0x3f7   :  { %v1479_v28 = vpop.f32.mrb[16].mxu0 }
 0x3f8   :  { %v1480_v29 = vadd.f32 %v1848_v14, %v1479_v28  ;;  %v2129_v30 = vpop.f32.mrb[17].mxu0 }
 0x3f9   :  { %v1482_v31 = vpop.f32.mrb[18].mxu0 }
 0x3fa   :  { %v1483_v32 = vadd.f32 %v1848_v14, %v1482_v31  ;;  %v2130_v33 = vpop.f32.mrb[19].mxu0  ;;  %v1486_v34 = vmax.f32 %v1480_v29, 0.0 }
 0x3fc   :  { %v1487_v35 = vmax.f32 %v1483_v32, 0.0 }
 0x3fe   :  { %v1488_v36 = vpack.c.bf16 %v1487_v35, %v1486_v34 }
 0x400   :  { %2148 = vmatmul.mubr.bf16.vlgmr.msra.gmra.mrb[20].mxu1 %v1488_v36 }
 0x4d3   :  { %v1594_v40 = vpop.f32.mrb[20].mxu1 }
 0x4d4   :  { %v1595_v41 = vadd.f32 %v1857_v39, %v1594_v40  ;;  %v2149_v43 = vpop.f32.mrb[21].mxu1 }
 0x4d5   :  { %v1597_v44 = vpop.f32.mrb[22].mxu1 }
 0x4d6   :  { %v1598_v45 = vadd.f32 %v1857_v39, %v1597_v44  ;;  %v2150_v46 = vpop.f32.mrb[23].mxu1  ;;  %v1601_v47 = vmax.f32 %v1595_v41, 0.0 }
 0x4d8   :  { %v1602_v48 = vmax.f32 %v1598_v45, 0.0 }
 0x4da   :  { %v1603_v49 = vpack.c.bf16 %v1602_v48, %v1601_v47 }
 0x4dc   :  { %2160 = vmatmul.mubr.msk.bf16.vlgmr.msra.gmra.mrb[20].mxu0 %vm1282_vm1, %v1603_v49 }
 0x5af   :  { %v1680_v50 = vpop.f32.mrb[20].mxu0 }
 0x5b0   :  { %v1681_v51 = vadd.f32 %v1866_v42, %v1680_v50  ;;  %v2161_v52 = vpop.f32.mrb[21].mxu0 }
 0x5b1   :  { %v1683_v53 = vpop.f32.mrb[22].mxu0 }
 0x5b2   :  { %v1687_v54 = vsub.f32 0.0, %v1681_v51  ;;  %v1684_v55 = vadd.f32 %v1866_v42, %v1683_v53  ;;  %v2162_v56 = vpop.f32.mrb[23].mxu0 }
 0x5b4   :  { %v1689_v57 = vmul.f32 1.442695, %v1687_v54  ;;  %v1688_v60 = vsub.f32 0.0, %v1684_v55 }
 0x5b6   :  { %2319 = vpow2.f32 %v1689_v57  ;;  %v1691_v61 = vmul.f32 1.442695, %v1688_v60 }
 0x5b8   :  { %2321 = vpow2.f32 %v1691_v61 }
 0x5c0   :  { %v2320_v58 = vpop.eup %2319 }
 0x5c1   :  { %v1693_v59 = vadd.f32 1.0, %v2320_v58 }
 0x5c2   :  { %v2322_v62 = vpop.eup %2321 }
 0x5c3   :  { %v1694_v63 = vadd.f32 1.0, %v2322_v62  ;;  %2323 = vrcp.f32 %v1693_v59 }
 0x5c5   :  { %2325 = vrcp.f32 %v1694_v63 }
 0x5cd   :  { %v2324_v0 = vpop.eup %2323 }
 0x5cf   :  { %v2326_v1 = vpop.eup %2325 }
 0x5d0   :  { %v1879_v2 = vpack.c.bf16 %v2326_v1, %v2324_v0 }
 0x5d2   :  { %1880 = vst [vmem:[#allocation2] sm:$0xff] %v1879_v2  }
 0x5d3   :  { %2338 = shalt.err (!%p2335_p4)
}
 0x5d4   :  { %s2339_s11 = scalar_lea.hbm %s2942_s10, 128 }
 0x5d5   :  { %p2340_p5 = scmp.ne.s32.totalorder %s2942_s10, %s2339_s11  ;;  %p2343_p6 = scmp.lt.u32.totalorder %s2339_s11, %s2942_s10 }
 0x5d7   :  { %p2345_p7 = pnand %p2343_p6, %p2340_p5 }
 0x5d9   :  { %2348 = shalt.err (!%p2345_p7)
}
 0x5da   :  { %s2354_s16 = smov 64   ;;  %s2355_s2 = smov 4  }
 0x5db   :  { %1720 = dma.vmem_to_hbm [thread:$0]  %s1715_s8, 128, %s2942_s10, [#allocation3], %s2354_s16, %s2354_s16, %s2355_s2  }
 0x5dc   :  { %2349 = dma.done.wait [#allocation3], 128  }
 0x5dd   :  { %2350 = vsyncadd [#allocation3], 4294967168 }
 0x5de   :  { %1724 = vsyncpa [#allocation3], 1 }

</bundles_post_ra>
